<compile_context>
chip_gen: v7x
topology: tpu7x:2x2x1
jax: 0.10.0
libtpu: 0.0.40
codegen_flags: <defaults>
</compile_context>

<pallas_src>
import jax
import jax.numpy as jnp
from jax.experimental import pallas as pl
from jax.experimental.pallas import tpu as pltpu


def mlp_kernel(x_ref, params_ref, b2_ref, o_ref):
    # x_ref     : (1, N_pad)  f32  VMEM  -- batch along lanes (lane-dense)
    # params_ref: (3*H, 1)    f32  VMEM  -- [w1; b1; w2] stacked along sublanes
    # b2_ref    : (1, 1)      f32  SMEM  -- scalar output bias
    # o_ref     : (1, N_pad)  f32  VMEM
    h_dim = params_ref.shape[0] // 3
    x = x_ref[...]                                   # (1, N_pad)
    w1 = params_ref[0:h_dim, :]                      # (H, 1) static, aligned
    b1 = params_ref[h_dim:2 * h_dim, :]              # (H, 1)
    w2 = params_ref[2 * h_dim:3 * h_dim, :]          # (H, 1)
    h = jnp.maximum(w1 * x + b1, 0.0)                # (H, N_pad)  VPU
    y = jnp.sum(h * w2, axis=0, keepdims=True)       # (1, N_pad)  XLU reduce
    o_ref[...] = (y + b2_ref[0, 0]).astype(o_ref.dtype)


def pack_params(w1, b1, w2):
    """Pack parameters once into a single (3*H, 1) f32 column.

    w1: (1, H)  (stored as (in, out), i.e. transposed vs torch weight)
    b1: (1, H) or (H,)
    w2: (H, 1)
    """
    h = w1.shape[1]
    return jnp.concatenate(
        [w1.reshape(h, 1), jnp.reshape(b1, (h, 1)), w2.reshape(h, 1)],
        axis=0).astype(jnp.float32)


def pad_batch_to_lanes(x):
    """(N, 1) -> (1, N_pad) lane-dense layout. Do this ONCE, outside the step."""
    n = x.shape[0]
    n_pad = ((n + 127) // 128) * 128
    return jnp.zeros((1, n_pad), jnp.float32).at[0, :n].set(
        x[:, 0].astype(jnp.float32))


def net_forward_lanes(x_lanes, params, b2):
    """Lane-dense forward step: (1, N_pad) -> (1, N_pad). Pad lanes are garbage."""
    n_pad = x_lanes.shape[1]
    h = params.shape[0] // 3
    b2_s = jnp.reshape(jnp.asarray(b2, jnp.float32), (1, 1))

    cost = pl.CostEstimate(
        flops=4 * h * n_pad,                       # fma + mul/add of reduce
        transcendentals=0,
        bytes_accessed=(2 * n_pad + 3 * h + 1) * 4,
    )

    return pl.pallas_call(
        mlp_kernel,
        out_shape=jax.ShapeDtypeStruct((1, n_pad), jnp.float32),
        in_specs=[
            pl.BlockSpec(memory_space=pltpu.MemorySpace.VMEM),   # x (lane-dense)
            pl.BlockSpec(memory_space=pltpu.MemorySpace.VMEM),   # packed params
            pl.BlockSpec(memory_space=pltpu.MemorySpace.SMEM),   # b2 (scalar)
        ],
        out_specs=pl.BlockSpec(memory_space=pltpu.MemorySpace.VMEM),
        cost_estimate=cost,
    )(x_lanes, params, b2_s)


def net_forward(x, w1, b1, w2, b2):
    """Convenience wrapper matching the PyTorch (N,1) -> (N,1) interface.

    Prefer pack_params / pad_batch_to_lanes + net_forward_lanes inside a
    training loop so the layout conversion is not paid every call.
    """
    n = x.shape[0]
    assert x.shape[1] == 1 and w1.shape[0] == 1 and w2.shape[1] == 1, (
        "this kernel is specialized to n_feature == n_output == 1")
    y = net_forward_lanes(pad_batch_to_lanes(x), pack_params(w1, b1, w2), b2)
    return y[0, :n].reshape(n, 1).astype(x.dtype)


if __name__ == "__main__":
    # Shapes implied by the PyTorch script: x = (100, 1); Net(1, hidden, 1).
    N_FEATURE, N_HIDDEN, N_OUTPUT, BATCH = 1, 32, 1, 100

    key = jax.random.PRNGKey(0)
    k1, k2, k3, k4 = jax.random.split(key, 4)

    # Input: torch.unsqueeze(torch.linspace(-1, 1, 100), dim=1) -> (100, 1)
    x = jnp.linspace(-1.0, 1.0, BATCH, dtype=jnp.float32)[:, None]

    # Deterministic parameter init (PyTorch Linear default:
    # U(-1/sqrt(fan_in), 1/sqrt(fan_in))), stored transposed as (in, out).
    bound1 = 1.0 / jnp.sqrt(jnp.float32(N_FEATURE))
    w1 = jax.random.uniform(k1, (N_FEATURE, N_HIDDEN), jnp.float32, -bound1, bound1)
    b1 = jax.random.uniform(k2, (1, N_HIDDEN), jnp.float32, -bound1, bound1)

    bound2 = 1.0 / jnp.sqrt(jnp.float32(N_HIDDEN))
    w2 = jax.random.uniform(k3, (N_HIDDEN, N_OUTPUT), jnp.float32, -bound2, bound2)
    b2 = jax.random.uniform(k4, (1, N_OUTPUT), jnp.float32, -bound2, bound2)

    # Persistent lane-dense layout: pad and pack ONCE, reuse across steps.
    x_lanes = pad_batch_to_lanes(x)
    params = pack_params(w1, b1, w2)

    y_lanes = net_forward_lanes(x_lanes, params, b2)
    y_lanes = jax.block_until_ready(y_lanes)

    # Back to the PyTorch layout for the correctness check.
    out = y_lanes[0, :BATCH].reshape(BATCH, 1)

    # Pure-JAX reference check.
    ref = jnp.maximum(x @ w1 + b1, 0.0) @ w2 + b2
    assert out.shape == (BATCH, N_OUTPUT)
    assert jnp.allclose(out, ref, atol=1e-5), "mismatch vs reference"

    # Also exercise the (N,1) convenience wrapper once.
    out2 = jax.block_until_ready(net_forward(x, w1, b1, w2, b2))
    assert jnp.allclose(out2, ref, atol=1e-5), "wrapper mismatch vs reference"

    print("KERNEL_OK")
</pallas_src>

<mosaic_0001>
module attributes {stable_mosaic.version = 11 : i64} {
  func.func @mlp_kernel(%arg0: memref<1x128xf32, #tpu.memory_space<vmem>>, %arg1: memref<96x1xf32, #tpu.memory_space<vmem>>, %arg2: memref<1x1xf32, #tpu.memory_space<smem>>, %arg3: memref<1x128xf32, #tpu.memory_space<vmem>>) attributes {dimension_semantics = [], scalar_prefetch = 0 : i64, scratch_operands = 0 : i64, tpu.core_type = #tpu.core_type<tc>} {
    %c0 = arith.constant 0 : index
    %c0_0 = arith.constant 0 : index
    %0 = vector.load %arg0[%c0, %c0_0] : memref<1x128xf32, #tpu.memory_space<vmem>>, vector<1x128xf32>
    %c0_1 = arith.constant 0 : index
    %c0_2 = arith.constant 0 : index
    %1 = vector.load %arg1[%c0_1, %c0_2] : memref<96x1xf32, #tpu.memory_space<vmem>>, vector<32x1xf32>
    %c32 = arith.constant 32 : index
    %c0_3 = arith.constant 0 : index
    %2 = vector.load %arg1[%c32, %c0_3] : memref<96x1xf32, #tpu.memory_space<vmem>>, vector<32x1xf32>
    %c64 = arith.constant 64 : index
    %c0_4 = arith.constant 0 : index
    %3 = vector.load %arg1[%c64, %c0_4] : memref<96x1xf32, #tpu.memory_space<vmem>>, vector<32x1xf32>
    %4 = vector.broadcast %1 : vector<32x1xf32> to vector<32x128xf32>
    %5 = vector.broadcast %0 : vector<1x128xf32> to vector<32x128xf32>
    %6 = arith.mulf %4, %5 : vector<32x128xf32>
    %7 = vector.broadcast %2 : vector<32x1xf32> to vector<32x128xf32>
    %8 = arith.addf %6, %7 : vector<32x128xf32>
    %cst = arith.constant 0.000000e+00 : f32
    %9 = vector.broadcast %cst : f32 to vector<32x128xf32>
    %10 = arith.maximumf %8, %9 : vector<32x128xf32>
    %11 = vector.broadcast %3 : vector<32x1xf32> to vector<32x128xf32>
    %12 = arith.mulf %10, %11 : vector<32x128xf32>
    %cst_5 = arith.constant dense<0.000000e+00> : vector<128xf32>
    %13 = vector.multi_reduction <add>, %12, %cst_5 [0] : vector<32x128xf32> to vector<128xf32>
    %14 = vector.shape_cast %13 : vector<128xf32> to vector<1x128xf32>
    %c0_6 = arith.constant 0 : index
    %c0_7 = arith.constant 0 : index
    %15 = memref.load %arg2[%c0_6, %c0_7] : memref<1x1xf32, #tpu.memory_space<smem>>
    %16 = vector.broadcast %15 : f32 to vector<1x128xf32>
    %17 = arith.addf %14, %16 : vector<1x128xf32>
    %c0_8 = arith.constant 0 : index
    %c0_9 = arith.constant 0 : index
    %18 = vector.load %arg3[%c0_8, %c0_9] : memref<1x128xf32, #tpu.memory_space<vmem>>, vector<1x128xf32>
    tpu.vector_store %arg3[%c0_8, %c0_9], %17 {strides = array<i32>} : memref<1x128xf32, #tpu.memory_space<vmem>>, vector<1x128xf32>,
    return
  }
}

</mosaic_0001>

<bundles_post_ra>
// kernel: tpu_custom_call.1
= control target key start
LH: loop header
LB: loop body
LE: loop exit
PB: predicated region body
PF: predicated region fallthrough
CT: control target
= control target key end

     0   :  { %v167_v2 = vmov 0   ;;  %s243_s0 = inlined_call_operand.vmem [shape: f32[1,128], index: 0, kind: input, shape index: {}]   ;;  %s244_s1 = inlined_call_operand.vmem [shape: f32[96,1], index: 1, kind: input, shape index: {}]   ;;  %s245_s2 = inlined_call_operand.<no memory space> [shape: f32[1,1], index: 2, kind: input, shape index: {}]   ;;  %s246_s3 = inlined_call_operand.hbm [shape: f32[1,128], index: 3, kind: output, shape index: {}]  }
   0x1   :  { %v19_v0 = vld [vmem:[%s244_s1 + $0x10] sm:$0xff]  ;;  %v17_v1 = vld [vmem:[%s244_s1] sm:$0xff]  ;;  %142 = vset.pattern.permute.xlu1 %v167_v2  ;;  %141 = vset.pattern.permute.xlu0 %v167_v2  ;;  %v18_v4 = vld [vmem:[%s244_s1 + $0x8] sm:$0xff] }
   0x2   :  { %41 = vperm.xlu1 %142, %v19_v0   ;;  %31 = vperm.xlu0 %141, %v17_v1   ;;  %v21_v3 = vld [vmem:[%s244_s1 + $0x20] sm:$0xff] }
   0x3   :  { %9 = vsyncpa [#allocation4], 0  ;;  %v20_v5 = vld [vmem:[%s244_s1 + $0x18] sm:$0xff]  ;;  %v22_v6 = vld [vmem:[%s244_s1 + $0x28] sm:$0xff]  ;;  %v121_v50 = vstv %s245_s2  ;;  %s168_s11 = smov [#allocation3]  }
   0x4   :  { %v24_v7 = vld [vmem:[%s244_s1 + $0x38] sm:$0xff]  ;;  %v23_v8 = vld [vmem:[%s244_s1 + $0x30] sm:$0xff]  ;;  %v26_v9 = vld [vmem:[%s244_s1 + $0x48] sm:$0xff]  ;;  %s130_s12 = sshll.u32 %s168_s11, 4  ;;  %s131_s12 = int_to_ptr.vmem [resolvable:$true] %s130_s12 }
   0x5   :  { %v25_v10 = vld [vmem:[%s244_s1 + $0x40] sm:$0xff]  ;;  %v28_v11 = vld [vmem:[%s244_s1 + $0x58] sm:$0xff]  ;;  %v27_v12 = vld [vmem:[%s244_s1 + $0x50] sm:$0xff]  ;;  %s143_s13 = scalar_lea.vmem %s131_s12, 16  ;;  %s147_s14 = scalar_lea.vmem %s131_s12, 32 }
   0x6   :  { %61 = vperm.xlu1 %142, %v21_v3   ;;  %36 = vperm.xlu0 %141, %v18_v4   ;;  %v138_v17 = vld [vmem:[%s243_s0] ss:$0 sm:$0xff]  ;;  %p144_p0 = scmp.ne.s32.totalorder %s131_s12, %s143_s13  ;;  %p148_p1 = scmp.lt.s32.totalorder %s131_s12, %s131_s12 }
   0x7   :  { %p149_p2 = scmp.lt.s32.totalorder %s147_s14, %s143_s13 }
   0x9   :  { %p150_p3 = por %p149_p2, %p148_p1 }
   0xa   :  { %46 = vperm.xlu1 %142, %v20_v5   ;;  %66 = vperm.xlu0 %141, %v22_v6  }
   0xb   :  { %p151_p4 = pnand %p150_p3, %p144_p0 }
   0xe   :  { %76 = vperm.xlu1 %142, %v24_v7   ;;  %71 = vperm.xlu0 %141, %v23_v8  }
  0x12   :  { %94 = vperm.xlu1 %142, %v26_v9   ;;  %89 = vperm.xlu0 %141, %v25_v10  }
  0x16   :  { %104 = vperm.xlu1 %142, %v28_v11   ;;  %99 = vperm.xlu0 %141, %v27_v12  }
  0x81   :  { %v42_v13 = vpop.permute.xlu1 %41  ;;  %v32_v14 = vpop.permute.xlu0 %31 }
  0x82   :  { %v55_v20 = vmul.f32 %v138_v17, %v32_v14  ;;  %v57_v26 = vmul.f32 %v138_v17, %v42_v13 }
  0x85   :  { %v62_v15 = vpop.permute.xlu1 %61  ;;  %v37_v16 = vpop.permute.xlu0 %36 }
  0x86   :  { %v56_v21 = vmul.f32 %v138_v17, %v37_v16  ;;  %v79_v22 = vadd.f32 %v62_v15, %v55_v20 }
  0x88   :  { %v83_v27 = vmax.f32 %v79_v22, 0.0 }
  0x89   :  { %v47_v18 = vpop.permute.xlu1 %46  ;;  %v67_v19 = vpop.permute.xlu0 %66 }
  0x8a   :  { %v80_v23 = vadd.f32 %v67_v19, %v56_v21  ;;  %v58_v28 = vmul.f32 %v138_v17, %v47_v18 }
  0x8c   :  { %v84_v29 = vmax.f32 %v80_v23, 0.0 }
  0x8d   :  { %v77_v24 = vpop.permute.xlu1 %76  ;;  %v72_v25 = vpop.permute.xlu0 %71 }
  0x8e   :  { %v81_v30 = vadd.f32 %v72_v25, %v57_v26  ;;  %v82_v33 = vadd.f32 %v77_v24, %v58_v28 }
  0x90   :  { %v85_v36 = vmax.f32 %v81_v30, 0.0  ;;  %v86_v39 = vmax.f32 %v82_v33, 0.0 }
  0x91   :  { %v95_v31 = vpop.permute.xlu1 %94  ;;  %v90_v32 = vpop.permute.xlu0 %89 }
  0x92   :  { %v108_v34 = vmul.f32 %v95_v31, %v84_v29  ;;  %v107_v35 = vmul.f32 %v90_v32, %v83_v27 }
  0x94   :  { %v111_v40 = vadd.f32 %v108_v34, %v107_v35 }
  0x95   :  { %v105_v37 = vpop.permute.xlu1 %104  ;;  %v100_v38 = vpop.permute.xlu0 %99 }
  0x96   :  { %v109_v41 = vmul.f32 %v100_v38, %v85_v36  ;;  %v110_v42 = vmul.f32 %v105_v37, %v86_v39 }
  0x98   :  { %v112_v43 = vadd.f32 %v111_v40, %v109_v41 }
  0x9a   :  { %v113_v44 = vadd.f32 %v112_v43, %v110_v42 }
  0x9c   :  { %v114_v45 = vrot.slane %v113_v44, 4 }
  0x9e   :  { %v115_v46 = vadd.f32 %v114_v45, %v113_v44 }
  0xa0   :  { %v116_v47 = vrot.slane %v115_v46, 2 }
  0xa2   :  { %v117_v48 = vadd.f32 %v116_v47, %v115_v46 }
  0xa4   :  { %v118_v49 = vrot.slane %v117_v48, 1 }
  0xa6   :  { %v119_v51 = vadd.f32 %v118_v49, %v117_v48 }
  0xa8   :  { %v122_v52 = vadd.f32 %v121_v50, %v119_v51 }
  0xaa   :  { %123 = vst [vmem:[#allocation3] sm:$0x1] %v122_v52 }
  0xab   :  { %154 = shalt.err (!%p151_p4)
}
  0xac   :  { %s155_s17 = scalar_lea.hbm %s246_s3, 16 }
  0xad   :  { %p156_p5 = scmp.ne.s32.totalorder %s246_s3, %s155_s17  ;;  %p159_p6 = scmp.lt.u32.totalorder %s155_s17, %s246_s3 }
  0xaf   :  { %p161_p7 = pnand %p159_p6, %p156_p5 }
  0xb1   :  { %164 = shalt.err (!%p161_p7)
}
  0xb2   :  { %133 = dma.vmem_to_hbm [thread:$0]  %s131_s12, 16, %s246_s3, [#allocation4]  }
  0xb3   :  { %165 = dma.done.wait [#allocation4], 16  }
  0xb4   :  { %166 = vsyncadd [#allocation4], 4294967280 }
  0xb5   :  { %137 = vsyncpa [#allocation4], 1 }

</bundles_post_ra>
